<compile_context>
chip_gen: v5e
topology: v5e:2x2
jax: 0.10.0
libtpu: 0.0.40
codegen_flags: <defaults>
</compile_context>

<pallas_src>
import functools

import jax
import jax.numpy as jnp
from jax import lax
from jax.experimental import pallas as pl
from jax.experimental.pallas import tpu as pltpu

n_embd = 32          # C
block_size = 128     # max sequence length (only tril[:T,:T] is ever used)
n_head = 4
dropout = 0.2        # TODO(synk): dropout omitted — kernel implements eval-mode (identity) dropout.
LN_EPS = 1e-5        # PyTorch nn.LayerNorm default eps


def _layernorm(x, w, b):
    """LayerNorm over the last axis (biased variance), affine via w, b."""
    mu = jnp.mean(x, axis=-1, keepdims=True)
    var = jnp.mean(jnp.square(x - mu), axis=-1, keepdims=True)
    return (x - mu) * lax.rsqrt(var + LN_EPS) * w + b


def block_kernel(x_ref,
                 ln1_w_ref, ln1_b_ref,
                 a_ref, wvo_ref, bo_ref,
                 ln2_w_ref, ln2_b_ref,
                 w1_ref, b1_ref, w2_ref, b2_ref,
                 o_ref, *, T, C, num_heads):
    """One grid step = Bt batch rows.

    x_ref   : (Bt, T, C)  f32
    a_ref   : (nh, C, C)  bf16   A_h   = C**0.5 * Wq_h^T @ Wk_h   (scores fold)
    wvo_ref : (nh, C, C)  bf16   Wvo_h = Wv_h^T @ Wo^T[h-block]   (proj fold)
    bo_ref  : (1, C)      f32    proj bias
    w1/b1, w2/b2 : FFN weights (bf16) / biases (f32)
    ln*_w/b : (1, C)      f32
    o_ref   : (Bt, T, C)
    """
    Bt = x_ref.shape[0]

    x = x_ref[...].astype(jnp.float32)               # (Bt, T, C)
    x2 = x.reshape(Bt * T, C)

    # ---- LayerNorm 1 (f32), then bf16 copies feeding the MXU ----
    h = _layernorm(x2, ln1_w_ref[...], ln1_b_ref[...])          # (Bt*T, C)  f32
    h_b = h.astype(jnp.bfloat16)                                 # MXU operand
    h3 = h_b.reshape(Bt, T, C)                                   # k-side of score einsum

    # causal mask, shared across heads
    row = lax.broadcasted_iota(jnp.int32, (T, T), 0)
    col = lax.broadcasted_iota(jnp.int32, (T, T), 1)
    causal = col <= row                                          # (T, T)

    acc = jnp.zeros((Bt, T, C), jnp.float32)
    for hd in range(num_heads):      # unrolled at trace time; everything lane-dense
        # scores: s = (h @ A_h) @ h^T  — no hs=8 tensors, no k transpose
        t = jnp.dot(h_b, a_ref[hd], preferred_element_type=jnp.float32)   # (Bt*T, C)
        t3 = t.astype(jnp.bfloat16).reshape(Bt, T, C)
        s = jnp.einsum('bqc,bkc->bqk', t3, h3,
                       preferred_element_type=jnp.float32)                # (Bt, T, T)
        s = jnp.where(causal, s, -jnp.inf)

        # numerically-stable softmax (f32); reciprocal on the EUP slot
        m = jnp.max(s, axis=-1, keepdims=True)
        e = jnp.exp(s - m)
        denom = jnp.sum(e, axis=-1, keepdims=True)
        p = (e * pl.reciprocal(denom, approx=True)).astype(jnp.bfloat16)

        # value with output projection folded in: contributes directly to (.., C)
        v = jnp.dot(h_b, wvo_ref[hd], preferred_element_type=jnp.float32)  # (Bt*T, C)
        v3 = v.astype(jnp.bfloat16).reshape(Bt, T, C)
        acc = acc + jnp.einsum('bqk,bkc->bqc', p, v3,
                               preferred_element_type=jnp.float32)

    # ---- residual 1 (proj matmul already folded into Wvo; bias added once) ----
    x1 = x2 + acc.reshape(Bt * T, C) + bo_ref[...]

    # ---- LayerNorm 2 + feed-forward (hidden 4C = 128 lanes, lane-dense) + residual ----
    h2 = _layernorm(x1, ln2_w_ref[...], ln2_b_ref[...]).astype(jnp.bfloat16)
    f = jnp.dot(h2, w1_ref[...], preferred_element_type=jnp.float32) + b1_ref[...]
    f = jnp.maximum(f, 0.0).astype(jnp.bfloat16)
    f = jnp.dot(f, w2_ref[...], preferred_element_type=jnp.float32) + b2_ref[...]
    out = x1 + f

    o_ref[...] = out.reshape(Bt, T, C).astype(o_ref.dtype)


def block_forward(x, params, *, block_batch=None):
    """x: (B, T, C). params: dict of PyTorch-layout weights (see __main__)."""
    B, T, C = x.shape
    nh = n_head
    hs = C // nh

    # ---- host-side weight folding; MXU operands cast to bf16 ----
    scale = jnp.float32(C) ** 0.5            # reference multiplies scores by C**0.5
    wo_t = params['proj_w'].T                # (C, C) == Wo^T
    a_list, wvo_list = [], []
    for hidx, p in enumerate(params['heads']):
        a_list.append((p['wq'].T * scale) @ p['wk'])                      # (C, C)
        wvo_list.append(p['wv'].T @ wo_t[hidx * hs:(hidx + 1) * hs, :])   # (C, C)
    a_all = jnp.stack(a_list, axis=0).astype(jnp.bfloat16)        # (nh, C, C)
    wvo_all = jnp.stack(wvo_list, axis=0).astype(jnp.bfloat16)    # (nh, C, C)

    bo = params['proj_b'].reshape(1, C).astype(jnp.float32)
    w1 = params['ff_w1'].T.astype(jnp.bfloat16)                   # (C, 4C)
    b1 = params['ff_b1'].reshape(1, 4 * C).astype(jnp.float32)
    w2 = params['ff_w2'].T.astype(jnp.bfloat16)                   # (4C, C)
    b2 = params['ff_b2'].reshape(1, C).astype(jnp.float32)
    ln1_w = params['ln1_w'].reshape(1, C).astype(jnp.float32)
    ln1_b = params['ln1_b'].reshape(1, C).astype(jnp.float32)
    ln2_w = params['ln2_w'].reshape(1, C).astype(jnp.float32)
    ln2_b = params['ln2_b'].reshape(1, C).astype(jnp.float32)

    # ---- per-step batch slab: amortize grid overhead, cap by a VMEM budget ----
    if block_batch is None:
        # rough f32 bytes of live temporaries per batch row (score/exp tensors
        # dominate, plus lane-padded (.., C=32) x-path temporaries)
        per_row = 4 * (4 * T * T + 12 * T * 128)
        bt = min(B, 64, max(1, (20 << 20) // per_row))
        if B >= 4:
            bt = max(1, min(bt, B // 2))   # keep >=2 grid steps (v7x megacore)
    else:
        bt = block_batch
    grid_b = pl.cdiv(B, bt)
    B_pad = grid_b * bt
    # ragged batch handled by padding (never degrade to bt=1)
    x_in = x if B_pad == B else jnp.pad(x, ((0, B_pad - B), (0, 0), (0, 0)))

    kernel = functools.partial(block_kernel, T=T, C=C, num_heads=nh)

    def rep(shape):
        return pl.BlockSpec(shape, lambda b, _n=len(shape): (0,) * _n)

    out = pl.pallas_call(
        kernel,
        out_shape=jax.ShapeDtypeStruct((B_pad, T, C), x.dtype),
        grid_spec=pltpu.PrefetchScalarGridSpec(
            num_scalar_prefetch=0,
            grid=(grid_b,),
            in_specs=[
                pl.BlockSpec((bt, T, C), lambda b: (b, 0, 0)),   # x slab
                rep((1, C)), rep((1, C)),                        # ln1 w, b
                rep((nh, C, C)),                                 # A_h   (scaled Wq^T Wk)
                rep((nh, C, C)),                                 # Wvo_h (Wv^T Wo-block)
                rep((1, C)),                                     # proj bias
                rep((1, C)), rep((1, C)),                        # ln2 w, b
                rep((C, 4 * C)), rep((1, 4 * C)),                # ff w1, b1
                rep((4 * C, C)), rep((1, C)),                    # ff w2, b2
            ],
            out_specs=pl.BlockSpec((bt, T, C), lambda b: (b, 0, 0)),
        ),
        compiler_params=pltpu.CompilerParams(
            dimension_semantics=("parallel",),
            vmem_limit_bytes=48 * 1024 * 1024),
    )(x_in, ln1_w, ln1_b, a_all, wvo_all, bo, ln2_w, ln2_b, w1, b1, w2, b2)

    return out if B_pad == B else out[:B]


def block_reference(x, params):
    """Pure-JAX f32 reference mirroring the PyTorch Block forward (eval mode)."""
    B, T, C = x.shape

    def ln(v, w, b):
        mu = v.mean(-1, keepdims=True)
        var = ((v - mu) ** 2).mean(-1, keepdims=True)
        return (v - mu) / jnp.sqrt(var + LN_EPS) * w + b

    h = ln(x, params['ln1_w'], params['ln1_b'])
    tril = jnp.tril(jnp.ones((T, T), dtype=bool))
    outs = []
    for p in params['heads']:
        k = h @ p['wk'].T
        q = h @ p['wq'].T
        v = h @ p['wv'].T
        wei = (q @ jnp.swapaxes(k, -2, -1)) * (C ** 0.5)
        wei = jnp.where(tril, wei, -jnp.inf)
        wei = jax.nn.softmax(wei, axis=-1)
        outs.append(wei @ v)
    sa = jnp.concatenate(outs, axis=-1) @ params['proj_w'].T + params['proj_b']
    x = x + sa
    h = ln(x, params['ln2_w'], params['ln2_b'])
    ff = jnp.maximum(h @ params['ff_w1'].T + params['ff_b1'], 0.0)
    ff = ff @ params['ff_w2'].T + params['ff_b2']
    return x + ff


if __name__ == "__main__":
    C = n_embd
    hs = C // n_head

    def make_inputs(seed, B, T):
        key = jax.random.fold_in(jax.random.PRNGKey(0), seed)
        keys = iter(jax.random.split(key, 32))
        x = jax.random.normal(next(keys), (B, T, C), dtype=jnp.float32)

        def lin(k, out_f, in_f):
            bound = 1.0 / (in_f ** 0.5)
            return jax.random.uniform(k, (out_f, in_f), jnp.float32, -bound, bound)

        def bias(k, out_f, in_f):
            bound = 1.0 / (in_f ** 0.5)
            return jax.random.uniform(k, (out_f,), jnp.float32, -bound, bound)

        heads = [{'wk': lin(next(keys), hs, C),
                  'wq': lin(next(keys), hs, C),
                  'wv': lin(next(keys), hs, C)} for _ in range(n_head)]
        params = {
            'heads': heads,
            'proj_w': lin(next(keys), C, C),
            'proj_b': bias(next(keys), C, C),
            'ff_w1': lin(next(keys), 4 * C, C),
            'ff_b1': bias(next(keys), 4 * C, C),
            'ff_w2': lin(next(keys), C, 4 * C),
            'ff_b2': bias(next(keys), C, 4 * C),
            'ln1_w': 1.0 + 0.1 * jax.random.normal(next(keys), (C,), jnp.float32),
            'ln1_b': 0.1 * jax.random.normal(next(keys), (C,), jnp.float32),
            'ln2_w': 1.0 + 0.1 * jax.random.normal(next(keys), (C,), jnp.float32),
            'ln2_b': 0.1 * jax.random.normal(next(keys), (C,), jnp.float32),
        }
        return x, params

    # Small smoke test + a T=128 case that exercises the full causal mask,
    # the ragged-batch padding path (B=5 -> bt=2, padded to 6) and a grid >= 2.
    for seed, (B, T) in [(0, (2, 8)), (1, (5, 128))]:
        x, params = make_inputs(seed, B, T)
        out = jax.block_until_ready(block_forward(x, params))
        ref = block_reference(x, params)
        assert out.shape == (B, T, C)
        err = float(jnp.max(jnp.abs(out - ref)))
        # bf16 MXU operands + approx softmax reciprocal (and the module's
        # C**0.5 score scaling, which sharpens the softmax) set the error
        # scale; typically ~1e-2 vs. the f32 reference.
        assert err < 1e-1, f"mismatch vs reference (B={B}, T={T}): max abs err {err}"

    print("KERNEL_OK")
</pallas_src>

<mosaic_0001>
module attributes {stable_mosaic.version = 11 : i64} {
  func.func @block_kernel(%arg0: i32, %arg1: memref<2x8x32xf32, #tpu.memory_space<vmem>>, %arg2: memref<1x32xf32, #tpu.memory_space<vmem>>, %arg3: memref<1x32xf32, #tpu.memory_space<vmem>>, %arg4: memref<4x32x32xbf16, #tpu.memory_space<vmem>>, %arg5: memref<4x32x32xbf16, #tpu.memory_space<vmem>>, %arg6: memref<1x32xf32, #tpu.memory_space<vmem>>, %arg7: memref<1x32xf32, #tpu.memory_space<vmem>>, %arg8: memref<1x32xf32, #tpu.memory_space<vmem>>, %arg9: memref<32x128xbf16, #tpu.memory_space<vmem>>, %arg10: memref<1x128xf32, #tpu.memory_space<vmem>>, %arg11: memref<128x32xbf16, #tpu.memory_space<vmem>>, %arg12: memref<1x32xf32, #tpu.memory_space<vmem>>, %arg13: memref<2x8x32xf32, #tpu.memory_space<vmem>>) attributes {dimension_semantics = [#tpu.dimension_semantics<parallel>], iteration_bounds = array<i64: 1>, scalar_prefetch = 0 : i64, scratch_operands = 0 : i64, tpu.core_type = #tpu.core_type<tc>, window_params = [{transform_indices = @transform_0, window_bounds = array<i64: 2, 8, 32>}, {pipeline_mode = #tpu.pipeline_mode<synchronous>, transform_indices = @transform_1, window_bounds = array<i64: 1, 32>}, {pipeline_mode = #tpu.pipeline_mode<synchronous>, transform_indices = @transform_2, window_bounds = array<i64: 1, 32>}, {pipeline_mode = #tpu.pipeline_mode<synchronous>, transform_indices = @transform_3, window_bounds = array<i64: 4, 32, 32>}, {pipeline_mode = #tpu.pipeline_mode<synchronous>, transform_indices = @transform_4, window_bounds = array<i64: 4, 32, 32>}, {pipeline_mode = #tpu.pipeline_mode<synchronous>, transform_indices = @transform_5, window_bounds = array<i64: 1, 32>}, {pipeline_mode = #tpu.pipeline_mode<synchronous>, transform_indices = @transform_6, window_bounds = array<i64: 1, 32>}, {pipeline_mode = #tpu.pipeline_mode<synchronous>, transform_indices = @transform_7, window_bounds = array<i64: 1, 32>}, {pipeline_mode = #tpu.pipeline_mode<synchronous>, transform_indices = @transform_8, window_bounds = array<i64: 32, 128>}, {pipeline_mode = #tpu.pipeline_mode<synchronous>, transform_indices = @transform_9, window_bounds = array<i64: 1, 128>}, {pipeline_mode = #tpu.pipeline_mode<synchronous>, transform_indices = @transform_10, window_bounds = array<i64: 128, 32>}, {pipeline_mode = #tpu.pipeline_mode<synchronous>, transform_indices = @transform_11, window_bounds = array<i64: 1, 32>}, {transform_indices = @transform_12, window_bounds = array<i64: 2, 8, 32>}]} {
    %c0 = arith.constant 0 : index
    %c0_0 = arith.constant 0 : index
    %c0_1 = arith.constant 0 : index
    %0 = vector.load %arg1[%c0, %c0_0, %c0_1] : memref<2x8x32xf32, #tpu.memory_space<vmem>>, vector<2x8x32xf32>
    %1 = vector.shape_cast %0 : vector<2x8x32xf32> to vector<16x32xf32>
    %c0_2 = arith.constant 0 : index
    %c0_3 = arith.constant 0 : index
    %2 = vector.load %arg2[%c0_2, %c0_3] : memref<1x32xf32, #tpu.memory_space<vmem>>, vector<1x32xf32>
    %c0_4 = arith.constant 0 : index
    %c0_5 = arith.constant 0 : index
    %3 = vector.load %arg3[%c0_4, %c0_5] : memref<1x32xf32, #tpu.memory_space<vmem>>, vector<1x32xf32>
    %cst = arith.constant dense<0.000000e+00> : vector<16xf32>
    %4 = vector.multi_reduction <add>, %1, %cst [1] : vector<16x32xf32> to vector<16xf32>
    %5 = vector.shape_cast %4 : vector<16xf32> to vector<16x1xf32>
    %cst_6 = arith.constant 3.200000e+01 : f32
    %6 = vector.broadcast %cst_6 : f32 to vector<16x1xf32>
    %7 = arith.divf %5, %6 : vector<16x1xf32>
    %8 = vector.broadcast %7 : vector<16x1xf32> to vector<16x32xf32>
    %9 = arith.subf %1, %8 : vector<16x32xf32>
    %10 = arith.mulf %9, %9 : vector<16x32xf32>
    %cst_7 = arith.constant dense<0.000000e+00> : vector<16xf32>
    %11 = vector.multi_reduction <add>, %10, %cst_7 [1] : vector<16x32xf32> to vector<16xf32>
    %12 = vector.shape_cast %11 : vector<16xf32> to vector<16x1xf32>
    %cst_8 = arith.constant 3.200000e+01 : f32
    %13 = vector.broadcast %cst_8 : f32 to vector<16x1xf32>
    %14 = arith.divf %12, %13 : vector<16x1xf32>
    %15 = vector.broadcast %7 : vector<16x1xf32> to vector<16x32xf32>
    %16 = arith.subf %1, %15 : vector<16x32xf32>
    %cst_9 = arith.constant 9.99999974E-6 : f32
    %17 = vector.broadcast %cst_9 : f32 to vector<16x1xf32>
    %18 = arith.addf %14, %17 : vector<16x1xf32>
    %19 = math.rsqrt %18 : vector<16x1xf32>
    %20 = vector.broadcast %19 : vector<16x1xf32> to vector<16x32xf32>
    %21 = arith.mulf %16, %20 : vector<16x32xf32>
    %22 = vector.broadcast %2 : vector<1x32xf32> to vector<16x32xf32>
    %23 = arith.mulf %21, %22 : vector<16x32xf32>
    %24 = vector.broadcast %3 : vector<1x32xf32> to vector<16x32xf32>
    %25 = arith.addf %23, %24 : vector<16x32xf32>
    %26 = arith.truncf %25 : vector<16x32xf32> to vector<16x32xbf16>
    %27 = vector.shape_cast %26 : vector<16x32xbf16> to vector<2x8x32xbf16>
    %28 = tpu.iota {dimensions = array<i32: 0>} : vector<8x8xi32>
    %29 = tpu.iota {dimensions = array<i32: 1>} : vector<8x8xi32>
    %30 = arith.cmpi sle, %29, %28 : vector<8x8xi32>
    %cst_10 = arith.constant 0.000000e+00 : f32
    %31 = vector.broadcast %cst_10 : f32 to vector<2x8x32xf32>
    %c0_11 = arith.constant 0 : index
    %c0_12 = arith.constant 0 : index
    %c0_13 = arith.constant 0 : index
    %32 = vector.load %arg4[%c0_11, %c0_12, %c0_13] : memref<4x32x32xbf16, #tpu.memory_space<vmem>>, vector<1x32x32xbf16>
    %33 = vector.shape_cast %32 : vector<1x32x32xbf16> to vector<32x32xbf16>
    %cst_14 = arith.constant dense<0.000000e+00> : vector<16x32xf32>
    %34 = tpu.matmul %26, %33, %cst_14 {dimension_numbers = #tpu.dot_dimension_numbers<[1], [0], [0], [1], [0, 0, 1, 1], [], []>} : vector<16x32xbf16>, vector<32x32xbf16>, vector<16x32xf32> -> vector<16x32xf32>
    %35 = arith.truncf %34 : vector<16x32xf32> to vector<16x32xbf16>
    %36 = vector.shape_cast %35 : vector<16x32xbf16> to vector<2x8x32xbf16>
    "tpu.trace_start"() <{level = 10 : i32, message = "bqc,bkc->bqk"}> : () -> ()
    %cst_15 = arith.constant dense<0.000000e+00> : vector<2x8x8xf32>
    %37 = tpu.matmul %36, %27, %cst_15 {dimension_numbers = #tpu.dot_dimension_numbers<[2], [2], [1], [1], [0, 0, 0, 1, 1, 1], [0], [0]>} : vector<2x8x32xbf16>, vector<2x8x32xbf16>, vector<2x8x8xf32> -> vector<2x8x8xf32>
    %cst_16 = arith.constant 0xFF800000 : f32
    "tpu.trace_stop"() : () -> ()
    %38 = vector.shape_cast %30 : vector<8x8xi1> to vector<1x8x8xi1>
    %39 = vector.broadcast %38 : vector<1x8x8xi1> to vector<2x8x8xi1>
    %40 = vector.broadcast %cst_16 : f32 to vector<2x8x8xf32>
    %41 = arith.select %39, %37, %40 : vector<2x8x8xi1>, vector<2x8x8xf32>
    %cst_17 = arith.constant dense<0xFF800000> : vector<2x8xf32>
    %42 = vector.multi_reduction <maximumf>, %41, %cst_17 [2] : vector<2x8x8xf32> to vector<2x8xf32>
    %43 = vector.shape_cast %42 : vector<2x8xf32> to vector<2x8x1xf32>
    %44 = vector.broadcast %43 : vector<2x8x1xf32> to vector<2x8x8xf32>
    %45 = arith.subf %41, %44 : vector<2x8x8xf32>
    %46 = math.exp %45 : vector<2x8x8xf32>
    %cst_18 = arith.constant dense<0.000000e+00> : vector<2x8xf32>
    %47 = vector.multi_reduction <add>, %46, %cst_18 [2] : vector<2x8x8xf32> to vector<2x8xf32>
    %48 = vector.shape_cast %47 : vector<2x8xf32> to vector<2x8x1xf32>
    %49 = tpu.reciprocal %48 {approx = true} : vector<2x8x1xf32> -> vector<2x8x1xf32>
    %50 = vector.broadcast %49 : vector<2x8x1xf32> to vector<2x8x8xf32>
    %51 = arith.mulf %46, %50 : vector<2x8x8xf32>
    %52 = arith.truncf %51 : vector<2x8x8xf32> to vector<2x8x8xbf16>
    %c0_19 = arith.constant 0 : index
    %c0_20 = arith.constant 0 : index
    %c0_21 = arith.constant 0 : index
    %53 = vector.load %arg5[%c0_19, %c0_20, %c0_21] : memref<4x32x32xbf16, #tpu.memory_space<vmem>>, vector<1x32x32xbf16>
    %54 = vector.shape_cast %53 : vector<1x32x32xbf16> to vector<32x32xbf16>
    %cst_22 = arith.constant dense<0.000000e+00> : vector<16x32xf32>
    %55 = tpu.matmul %26, %54, %cst_22 {dimension_numbers = #tpu.dot_dimension_numbers<[1], [0], [0], [1], [0, 0, 1, 1], [], []>} : vector<16x32xbf16>, vector<32x32xbf16>, vector<16x32xf32> -> vector<16x32xf32>
    %56 = arith.truncf %55 : vector<16x32xf32> to vector<16x32xbf16>
    %57 = vector.shape_cast %56 : vector<16x32xbf16> to vector<2x8x32xbf16>
    "tpu.trace_start"() <{level = 10 : i32, message = "bqk,bkc->bqc"}> : () -> ()
    %cst_23 = arith.constant dense<0.000000e+00> : vector<2x8x32xf32>
    %58 = tpu.matmul %52, %57, %cst_23 {dimension_numbers = #tpu.dot_dimension_numbers<[2], [1], [1], [2], [0, 0, 0, 1, 1, 2], [0], [0]>} : vector<2x8x8xbf16>, vector<2x8x32xbf16>, vector<2x8x32xf32> -> vector<2x8x32xf32>
    "tpu.trace_stop"() : () -> ()
    %59 = arith.addf %31, %58 : vector<2x8x32xf32>
    %c1 = arith.constant 1 : index
    %c0_24 = arith.constant 0 : index
    %c0_25 = arith.constant 0 : index
    %60 = vector.load %arg4[%c1, %c0_24, %c0_25] : memref<4x32x32xbf16, #tpu.memory_space<vmem>>, vector<1x32x32xbf16>
    %61 = vector.shape_cast %60 : vector<1x32x32xbf16> to vector<32x32xbf16>
    %cst_26 = arith.constant dense<0.000000e+00> : vector<16x32xf32>
    %62 = tpu.matmul %26, %61, %cst_26 {dimension_numbers = #tpu.dot_dimension_numbers<[1], [0], [0], [1], [0, 0, 1, 1], [], []>} : vector<16x32xbf16>, vector<32x32xbf16>, vector<16x32xf32> -> vector<16x32xf32>
    %63 = arith.truncf %62 : vector<16x32xf32> to vector<16x32xbf16>
    %64 = vector.shape_cast %63 : vector<16x32xbf16> to vector<2x8x32xbf16>
    "tpu.trace_start"() <{level = 10 : i32, message = "bqc,bkc->bqk"}> : () -> ()
    %cst_27 = arith.constant dense<0.000000e+00> : vector<2x8x8xf32>
    %65 = tpu.matmul %64, %27, %cst_27 {dimension_numbers = #tpu.dot_dimension_numbers<[2], [2], [1], [1], [0, 0, 0, 1, 1, 1], [0], [0]>} : vector<2x8x32xbf16>, vector<2x8x32xbf16>, vector<2x8x8xf32> -> vector<2x8x8xf32>
    %cst_28 = arith.constant 0xFF800000 : f32
    "tpu.trace_stop"() : () -> ()
    %66 = vector.shape_cast %30 : vector<8x8xi1> to vector<1x8x8xi1>
    %67 = vector.broadcast %66 : vector<1x8x8xi1> to vector<2x8x8xi1>
    %68 = vector.broadcast %cst_28 : f32 to vector<2x8x8xf32>
    %69 = arith.select %67, %65, %68 : vector<2x8x8xi1>, vector<2x8x8xf32>
    %cst_29 = arith.constant dense<0xFF800000> : vector<2x8xf32>
    %70 = vector.multi_reduction <maximumf>, %69, %cst_29 [2] : vector<2x8x8xf32> to vector<2x8xf32>
    %71 = vector.shape_cast %70 : vector<2x8xf32> to vector<2x8x1xf32>
    %72 = vector.broadcast %71 : vector<2x8x1xf32> to vector<2x8x8xf32>
    %73 = arith.subf %69, %72 : vector<2x8x8xf32>
    %74 = math.exp %73 : vector<2x8x8xf32>
    %cst_30 = arith.constant dense<0.000000e+00> : vector<2x8xf32>
    %75 = vector.multi_reduction <add>, %74, %cst_30 [2] : vector<2x8x8xf32> to vector<2x8xf32>
    %76 = vector.shape_cast %75 : vector<2x8xf32> to vector<2x8x1xf32>
    %77 = tpu.reciprocal %76 {approx = true} : vector<2x8x1xf32> -> vector<2x8x1xf32>
    %78 = vector.broadcast %77 : vector<2x8x1xf32> to vector<2x8x8xf32>
    %79 = arith.mulf %74, %78 : vector<2x8x8xf32>
    %80 = arith.truncf %79 : vector<2x8x8xf32> to vector<2x8x8xbf16>
    %c1_31 = arith.constant 1 : index
    %c0_32 = arith.constant 0 : index
    %c0_33 = arith.constant 0 : index
    %81 = vector.load %arg5[%c1_31, %c0_32, %c0_33] : memref<4x32x32xbf16, #tpu.memory_space<vmem>>, vector<1x32x32xbf16>
    %82 = vector.shape_cast %81 : vector<1x32x32xbf16> to vector<32x32xbf16>
    %cst_34 = arith.constant dense<0.000000e+00> : vector<16x32xf32>
    %83 = tpu.matmul %26, %82, %cst_34 {dimension_numbers = #tpu.dot_dimension_numbers<[1], [0], [0], [1], [0, 0, 1, 1], [], []>} : vector<16x32xbf16>, vector<32x32xbf16>, vector<16x32xf32> -> vector<16x32xf32>
    %84 = arith.truncf %83 : vector<16x32xf32> to vector<16x32xbf16>
    %85 = vector.shape_cast %84 : vector<16x32xbf16> to vector<2x8x32xbf16>
    "tpu.trace_start"() <{level = 10 : i32, message = "bqk,bkc->bqc"}> : () -> ()
    %cst_35 = arith.constant dense<0.000000e+00> : vector<2x8x32xf32>
    %86 = tpu.matmul %80, %85, %cst_35 {dimension_numbers = #tpu.dot_dimension_numbers<[2], [1], [1], [2], [0, 0, 0, 1, 1, 2], [0], [0]>} : vector<2x8x8xbf16>, vector<2x8x32xbf16>, vector<2x8x32xf32> -> vector<2x8x32xf32>
    "tpu.trace_stop"() : () -> ()
    %87 = arith.addf %59, %86 : vector<2x8x32xf32>
    %c2 = arith.constant 2 : index
    %c0_36 = arith.constant 0 : index
    %c0_37 = arith.constant 0 : index
    %88 = vector.load %arg4[%c2, %c0_36, %c0_37] : memref<4x32x32xbf16, #tpu.memory_space<vmem>>, vector<1x32x32xbf16>
    %89 = vector.shape_cast %88 : vector<1x32x32xbf16> to vector<32x32xbf16>
    %cst_38 = arith.constant dense<0.000000e+00> : vector<16x32xf32>
    %90 = tpu.matmul %26, %89, %cst_38 {dimension_numbers = #tpu.dot_dimension_numbers<[1], [0], [0], [1], [0, 0, 1, 1], [], []>} : vector<16x32xbf16>, vector<32x32xbf16>, vector<16x32xf32> -> vector<16x32xf32>
    %91 = arith.truncf %90 : vector<16x32xf32> to vector<16x32xbf16>
    %92 = vector.shape_cast %91 : vector<16x32xbf16> to vector<2x8x32xbf16>
    "tpu.trace_start"() <{level = 10 : i32, message = "bqc,bkc->bqk"}> : () -> ()
    %cst_39 = arith.constant dense<0.000000e+00> : vector<2x8x8xf32>
    %93 = tpu.matmul %92, %27, %cst_39 {dimension_numbers = #tpu.dot_dimension_numbers<[2], [2], [1], [1], [0, 0, 0, 1, 1, 1], [0], [0]>} : vector<2x8x32xbf16>, vector<2x8x32xbf16>, vector<2x8x8xf32> -> vector<2x8x8xf32>
    %cst_40 = arith.constant 0xFF800000 : f32
    "tpu.trace_stop"() : () -> ()
    %94 = vector.shape_cast %30 : vector<8x8xi1> to vector<1x8x8xi1>
    %95 = vector.broadcast %94 : vector<1x8x8xi1> to vector<2x8x8xi1>
    %96 = vector.broadcast %cst_40 : f32 to vector<2x8x8xf32>
    %97 = arith.select %95, %93, %96 : vector<2x8x8xi1>, vector<2x8x8xf32>
    %cst_41 = arith.constant dense<0xFF800000> : vector<2x8xf32>
    %98 = vector.multi_reduction <maximumf>, %97, %cst_41 [2] : vector<2x8x8xf32> to vector<2x8xf32>
    %99 = vector.shape_cast %98 : vector<2x8xf32> to vector<2x8x1xf32>
    %100 = vector.broadcast %99 : vector<2x8x1xf32> to vector<2x8x8xf32>
    %101 = arith.subf %97, %100 : vector<2x8x8xf32>
    %102 = math.exp %101 : vector<2x8x8xf32>
    %cst_42 = arith.constant dense<0.000000e+00> : vector<2x8xf32>
    %103 = vector.multi_reduction <add>, %102, %cst_42 [2] : vector<2x8x8xf32> to vector<2x8xf32>
    %104 = vector.shape_cast %103 : vector<2x8xf32> to vector<2x8x1xf32>
    %105 = tpu.reciprocal %104 {approx = true} : vector<2x8x1xf32> -> vector<2x8x1xf32>
    %106 = vector.broadcast %105 : vector<2x8x1xf32> to vector<2x8x8xf32>
    %107 = arith.mulf %102, %106 : vector<2x8x8xf32>
    %108 = arith.truncf %107 : vector<2x8x8xf32> to vector<2x8x8xbf16>
    %c2_43 = arith.constant 2 : index
    %c0_44 = arith.constant 0 : index
    %c0_45 = arith.constant 0 : index
    %109 = vector.load %arg5[%c2_43, %c0_44, %c0_45] : memref<4x32x32xbf16, #tpu.memory_space<vmem>>, vector<1x32x32xbf16>
    %110 = vector.shape_cast %109 : vector<1x32x32xbf16> to vector<32x32xbf16>
    %cst_46 = arith.constant dense<0.000000e+00> : vector<16x32xf32>
    %111 = tpu.matmul %26, %110, %cst_46 {dimension_numbers = #tpu.dot_dimension_numbers<[1], [0], [0], [1], [0, 0, 1, 1], [], []>} : vector<16x32xbf16>, vector<32x32xbf16>, vector<16x32xf32> -> vector<16x32xf32>
    %112 = arith.truncf %111 : vector<16x32xf32> to vector<16x32xbf16>
    %113 = vector.shape_cast %112 : vector<16x32xbf16> to vector<2x8x32xbf16>
    "tpu.trace_start"() <{level = 10 : i32, message = "bqk,bkc->bqc"}> : () -> ()
    %cst_47 = arith.constant dense<0.000000e+00> : vector<2x8x32xf32>
    %114 = tpu.matmul %108, %113, %cst_47 {dimension_numbers = #tpu.dot_dimension_numbers<[2], [1], [1], [2], [0, 0, 0, 1, 1, 2], [0], [0]>} : vector<2x8x8xbf16>, vector<2x8x32xbf16>, vector<2x8x32xf32> -> vector<2x8x32xf32>
    "tpu.trace_stop"() : () -> ()
    %115 = arith.addf %87, %114 : vector<2x8x32xf32>
    %c3 = arith.constant 3 : index
    %c0_48 = arith.constant 0 : index
    %c0_49 = arith.constant 0 : index
    %116 = vector.load %arg4[%c3, %c0_48, %c0_49] : memref<4x32x32xbf16, #tpu.memory_space<vmem>>, vector<1x32x32xbf16>
    %117 = vector.shape_cast %116 : vector<1x32x32xbf16> to vector<32x32xbf16>
    %cst_50 = arith.constant dense<0.000000e+00> : vector<16x32xf32>
    %118 = tpu.matmul %26, %117, %cst_50 {dimension_numbers = #tpu.dot_dimension_numbers<[1], [0], [0], [1], [0, 0, 1, 1], [], []>} : vector<16x32xbf16>, vector<32x32xbf16>, vector<16x32xf32> -> vector<16x32xf32>
    %119 = arith.truncf %118 : vector<16x32xf32> to vector<16x32xbf16>
    %120 = vector.shape_cast %119 : vector<16x32xbf16> to vector<2x8x32xbf16>
    "tpu.trace_start"() <{level = 10 : i32, message = "bqc,bkc->bqk"}> : () -> ()
    %cst_51 = arith.constant dense<0.000000e+00> : vector<2x8x8xf32>
    %121 = tpu.matmul %120, %27, %cst_51 {dimension_numbers = #tpu.dot_dimension_numbers<[2], [2], [1], [1], [0, 0, 0, 1, 1, 1], [0], [0]>} : vector<2x8x32xbf16>, vector<2x8x32xbf16>, vector<2x8x8xf32> -> vector<2x8x8xf32>
    %cst_52 = arith.constant 0xFF800000 : f32
    "tpu.trace_stop"() : () -> ()
    %122 = vector.shape_cast %30 : vector<8x8xi1> to vector<1x8x8xi1>
    %123 = vector.broadcast %122 : vector<1x8x8xi1> to vector<2x8x8xi1>
    %124 = vector.broadcast %cst_52 : f32 to vector<2x8x8xf32>
    %125 = arith.select %123, %121, %124 : vector<2x8x8xi1>, vector<2x8x8xf32>
    %cst_53 = arith.constant dense<0xFF800000> : vector<2x8xf32>
    %126 = vector.multi_reduction <maximumf>, %125, %cst_53 [2] : vector<2x8x8xf32> to vector<2x8xf32>
    %127 = vector.shape_cast %126 : vector<2x8xf32> to vector<2x8x1xf32>
    %128 = vector.broadcast %127 : vector<2x8x1xf32> to vector<2x8x8xf32>
    %129 = arith.subf %125, %128 : vector<2x8x8xf32>
    %130 = math.exp %129 : vector<2x8x8xf32>
    %cst_54 = arith.constant dense<0.000000e+00> : vector<2x8xf32>
    %131 = vector.multi_reduction <add>, %130, %cst_54 [2] : vector<2x8x8xf32> to vector<2x8xf32>
    %132 = vector.shape_cast %131 : vector<2x8xf32> to vector<2x8x1xf32>
    %133 = tpu.reciprocal %132 {approx = true} : vector<2x8x1xf32> -> vector<2x8x1xf32>
    %134 = vector.broadcast %133 : vector<2x8x1xf32> to vector<2x8x8xf32>
    %135 = arith.mulf %130, %134 : vector<2x8x8xf32>
    %136 = arith.truncf %135 : vector<2x8x8xf32> to vector<2x8x8xbf16>
    %c3_55 = arith.constant 3 : index
    %c0_56 = arith.constant 0 : index
    %c0_57 = arith.constant 0 : index
    %137 = vector.load %arg5[%c3_55, %c0_56, %c0_57] : memref<4x32x32xbf16, #tpu.memory_space<vmem>>, vector<1x32x32xbf16>
    %138 = vector.shape_cast %137 : vector<1x32x32xbf16> to vector<32x32xbf16>
    %cst_58 = arith.constant dense<0.000000e+00> : vector<16x32xf32>
    %139 = tpu.matmul %26, %138, %cst_58 {dimension_numbers = #tpu.dot_dimension_numbers<[1], [0], [0], [1], [0, 0, 1, 1], [], []>} : vector<16x32xbf16>, vector<32x32xbf16>, vector<16x32xf32> -> vector<16x32xf32>
    %140 = arith.truncf %139 : vector<16x32xf32> to vector<16x32xbf16>
    %141 = vector.shape_cast %140 : vector<16x32xbf16> to vector<2x8x32xbf16>
    "tpu.trace_start"() <{level = 10 : i32, message = "bqk,bkc->bqc"}> : () -> ()
    %cst_59 = arith.constant dense<0.000000e+00> : vector<2x8x32xf32>
    %142 = tpu.matmul %136, %141, %cst_59 {dimension_numbers = #tpu.dot_dimension_numbers<[2], [1], [1], [2], [0, 0, 0, 1, 1, 2], [0], [0]>} : vector<2x8x8xbf16>, vector<2x8x32xbf16>, vector<2x8x32xf32> -> vector<2x8x32xf32>
    "tpu.trace_stop"() : () -> ()
    %143 = arith.addf %115, %142 : vector<2x8x32xf32>
    %144 = vector.shape_cast %143 : vector<2x8x32xf32> to vector<16x32xf32>
    %145 = arith.addf %1, %144 : vector<16x32xf32>
    %c0_60 = arith.constant 0 : index
    %c0_61 = arith.constant 0 : index
    %146 = vector.load %arg6[%c0_60, %c0_61] : memref<1x32xf32, #tpu.memory_space<vmem>>, vector<1x32xf32>
    %147 = vector.broadcast %146 : vector<1x32xf32> to vector<16x32xf32>
    %148 = arith.addf %145, %147 : vector<16x32xf32>
    %c0_62 = arith.constant 0 : index
    %c0_63 = arith.constant 0 : index
    %149 = vector.load %arg7[%c0_62, %c0_63] : memref<1x32xf32, #tpu.memory_space<vmem>>, vector<1x32xf32>
    %c0_64 = arith.constant 0 : index
    %c0_65 = arith.constant 0 : index
    %150 = vector.load %arg8[%c0_64, %c0_65] : memref<1x32xf32, #tpu.memory_space<vmem>>, vector<1x32xf32>
    %cst_66 = arith.constant dense<0.000000e+00> : vector<16xf32>
    %151 = vector.multi_reduction <add>, %148, %cst_66 [1] : vector<16x32xf32> to vector<16xf32>
    %152 = vector.shape_cast %151 : vector<16xf32> to vector<16x1xf32>
    %cst_67 = arith.constant 3.200000e+01 : f32
    %153 = vector.broadcast %cst_67 : f32 to vector<16x1xf32>
    %154 = arith.divf %152, %153 : vector<16x1xf32>
    %155 = vector.broadcast %154 : vector<16x1xf32> to vector<16x32xf32>
    %156 = arith.subf %148, %155 : vector<16x32xf32>
    %157 = arith.mulf %156, %156 : vector<16x32xf32>
    %cst_68 = arith.constant dense<0.000000e+00> : vector<16xf32>
    %158 = vector.multi_reduction <add>, %157, %cst_68 [1] : vector<16x32xf32> to vector<16xf32>
    %159 = vector.shape_cast %158 : vector<16xf32> to vector<16x1xf32>
    %cst_69 = arith.constant 3.200000e+01 : f32
    %160 = vector.broadcast %cst_69 : f32 to vector<16x1xf32>
    %161 = arith.divf %159, %160 : vector<16x1xf32>
    %162 = vector.broadcast %154 : vector<16x1xf32> to vector<16x32xf32>
    %163 = arith.subf %148, %162 : vector<16x32xf32>
    %cst_70 = arith.constant 9.99999974E-6 : f32
    %164 = vector.broadcast %cst_70 : f32 to vector<16x1xf32>
    %165 = arith.addf %161, %164 : vector<16x1xf32>
    %166 = math.rsqrt %165 : vector<16x1xf32>
    %167 = vector.broadcast %166 : vector<16x1xf32> to vector<16x32xf32>
    %168 = arith.mulf %163, %167 : vector<16x32xf32>
    %169 = vector.broadcast %149 : vector<1x32xf32> to vector<16x32xf32>
    %170 = arith.mulf %168, %169 : vector<16x32xf32>
    %171 = vector.broadcast %150 : vector<1x32xf32> to vector<16x32xf32>
    %172 = arith.addf %170, %171 : vector<16x32xf32>
    %173 = arith.truncf %172 : vector<16x32xf32> to vector<16x32xbf16>
    %c0_71 = arith.constant 0 : index
    %c0_72 = arith.constant 0 : index
    %174 = vector.load %arg9[%c0_71, %c0_72] : memref<32x128xbf16, #tpu.memory_space<vmem>>, vector<32x128xbf16>
    %cst_73 = arith.constant dense<0.000000e+00> : vector<16x128xf32>
    %175 = tpu.matmul %173, %174, %cst_73 {dimension_numbers = #tpu.dot_dimension_numbers<[1], [0], [0], [1], [0, 0, 1, 1], [], []>} : vector<16x32xbf16>, vector<32x128xbf16>, vector<16x128xf32> -> vector<16x128xf32>
    %c0_74 = arith.constant 0 : index
    %c0_75 = arith.constant 0 : index
    %176 = vector.load %arg10[%c0_74, %c0_75] : memref<1x128xf32, #tpu.memory_space<vmem>>, vector<1x128xf32>
    %177 = vector.broadcast %176 : vector<1x128xf32> to vector<16x128xf32>
    %178 = arith.addf %175, %177 : vector<16x128xf32>
    %cst_76 = arith.constant 0.000000e+00 : f32
    %179 = vector.broadcast %cst_76 : f32 to vector<16x128xf32>
    %180 = arith.maximumf %178, %179 : vector<16x128xf32>
    %181 = arith.truncf %180 : vector<16x128xf32> to vector<16x128xbf16>
    %c0_77 = arith.constant 0 : index
    %c0_78 = arith.constant 0 : index
    %182 = vector.load %arg11[%c0_77, %c0_78] : memref<128x32xbf16, #tpu.memory_space<vmem>>, vector<128x32xbf16>
    %cst_79 = arith.constant dense<0.000000e+00> : vector<16x32xf32>
    %183 = tpu.matmul %181, %182, %cst_79 {dimension_numbers = #tpu.dot_dimension_numbers<[1], [0], [0], [1], [0, 0, 1, 1], [], []>} : vector<16x128xbf16>, vector<128x32xbf16>, vector<16x32xf32> -> vector<16x32xf32>
    %c0_80 = arith.constant 0 : index
    %c0_81 = arith.constant 0 : index
    %184 = vector.load %arg12[%c0_80, %c0_81] : memref<1x32xf32, #tpu.memory_space<vmem>>, vector<1x32xf32>
    %185 = vector.broadcast %184 : vector<1x32xf32> to vector<16x32xf32>
    %186 = arith.addf %183, %185 : vector<16x32xf32>
    %187 = arith.addf %148, %186 : vector<16x32xf32>
    %188 = vector.shape_cast %187 : vector<16x32xf32> to vector<2x8x32xf32>
    %c0_82 = arith.constant 0 : index
    %c0_83 = arith.constant 0 : index
    %c0_84 = arith.constant 0 : index
    %189 = vector.load %arg13[%c0_82, %c0_83, %c0_84] : memref<2x8x32xf32, #tpu.memory_space<vmem>>, vector<2x8x32xf32>
    tpu.vector_store %arg13[%c0_82, %c0_83, %c0_84], %188 {strides = array<i32>} : memref<2x8x32xf32, #tpu.memory_space<vmem>>, vector<2x8x32xf32>,
    return
  }
  func.func @transform_0(%arg0: i32) -> (i32, i32, i32) {
    %c0_i32 = arith.constant 0 : i32
    %c0_i32_0 = arith.constant 0 : i32
    %c0_i32_1 = arith.constant 0 : i32
    return %arg0, %c0_i32, %c0_i32_0 : i32, i32, i32
  }
  func.func @transform_1(%arg0: i32) -> (i32, i32) {
    %c0_i32 = arith.constant 0 : i32
    %c0_i32_0 = arith.constant 0 : i32
    %c0_i32_1 = arith.constant 0 : i32
    return %c0_i32, %c0_i32_0 : i32, i32
  }
  func.func @transform_2(%arg0: i32) -> (i32, i32) {
    %c0_i32 = arith.constant 0 : i32
    %c0_i32_0 = arith.constant 0 : i32
    %c0_i32_1 = arith.constant 0 : i32
    return %c0_i32, %c0_i32_0 : i32, i32
  }
  func.func @transform_3(%arg0: i32) -> (i32, i32, i32) {
    %c0_i32 = arith.constant 0 : i32
    %c0_i32_0 = arith.constant 0 : i32
    %c0_i32_1 = arith.constant 0 : i32
    %c0_i32_2 = arith.constant 0 : i32
    return %c0_i32, %c0_i32_0, %c0_i32_1 : i32, i32, i32
  }
  func.func @transform_4(%arg0: i32) -> (i32, i32, i32) {
    %c0_i32 = arith.constant 0 : i32
    %c0_i32_0 = arith.constant 0 : i32
    %c0_i32_1 = arith.constant 0 : i32
    %c0_i32_2 = arith.constant 0 : i32
    return %c0_i32, %c0_i32_0, %c0_i32_1 : i32, i32, i32
  }
  func.func @transform_5(%arg0: i32) -> (i32, i32) {
    %c0_i32 = arith.constant 0 : i32
    %c0_i32_0 = arith.constant 0 : i32
    %c0_i32_1 = arith.constant 0 : i32
    return %c0_i32, %c0_i32_0 : i32, i32
  }
  func.func @transform_6(%arg0: i32) -> (i32, i32) {
    %c0_i32 = arith.constant 0 : i32
    %c0_i32_0 = arith.constant 0 : i32
    %c0_i32_1 = arith.constant 0 : i32
    return %c0_i32, %c0_i32_0 : i32, i32
  }
  func.func @transform_7(%arg0: i32) -> (i32, i32) {
    %c0_i32 = arith.constant 0 : i32
    %c0_i32_0 = arith.constant 0 : i32
    %c0_i32_1 = arith.constant 0 : i32
    return %c0_i32, %c0_i32_0 : i32, i32
  }
  func.func @transform_8(%arg0: i32) -> (i32, i32) {
    %c0_i32 = arith.constant 0 : i32
    %c0_i32_0 = arith.constant 0 : i32
    %c0_i32_1 = arith.constant 0 : i32
    return %c0_i32, %c0_i32_0 : i32, i32
  }
  func.func @transform_9(%arg0: i32) -> (i32, i32) {
    %c0_i32 = arith.constant 0 : i32
    %c0_i32_0 = arith.constant 0 : i32
    %c0_i32_1 = arith.constant 0 : i32
    return %c0_i32, %c0_i32_0 : i32, i32
  }
  func.func @transform_10(%arg0: i32) -> (i32, i32) {
    %c0_i32 = arith.constant 0 : i32
    %c0_i32_0 = arith.constant 0 : i32
    %c0_i32_1 = arith.constant 0 : i32
    return %c0_i32, %c0_i32_0 : i32, i32
  }
  func.func @transform_11(%arg0: i32) -> (i32, i32) {
    %c0_i32 = arith.constant 0 : i32
    %c0_i32_0 = arith.constant 0 : i32
    %c0_i32_1 = arith.constant 0 : i32
    return %c0_i32, %c0_i32_0 : i32, i32
  }
  func.func @transform_12(%arg0: i32) -> (i32, i32, i32) {
    %c0_i32 = arith.constant 0 : i32
    %c0_i32_0 = arith.constant 0 : i32
    %c0_i32_1 = arith.constant 0 : i32
    return %arg0, %c0_i32, %c0_i32_0 : i32, i32, i32
  }
}

</mosaic_0001>

<bundles_post_ra>
// kernel: tpu_custom_call.1
= control target key start
LH: loop header
LB: loop body
LE: loop exit
PB: predicated region body
PF: predicated region fallthrough
CT: control target
= control target key end

     0   :  { %17 = vsyncpa [#allocation3], 0  ;;  %s1625_s0 = inlined_call_operand.vmem [shape: f32[2,8,32], index: 0, kind: input, shape index: {}]   ;;  %s1626_s1 = inlined_call_operand.vmem [shape: f32[1,32], index: 1, kind: input, shape index: {}]   ;;  %s1627_s2 = inlined_call_operand.vmem [shape: f32[1,32], index: 2, kind: input, shape index: {}]   ;;  %s1628_s3 = inlined_call_operand.vmem [shape: bf16[4,32,32], index: 3, kind: input, shape index: {}]   ;;  %s1629_s4 = inlined_call_operand.hbm [shape: bf16[4,32,32], index: 4, kind: input, shape index: {}]   ;;  %s1630_s5 = inlined_call_operand.vmem [shape: f32[1,32], index: 5, kind: input, shape index: {}]   ;;  %s1631_s6 = inlined_call_operand.vmem [shape: f32[1,32], index: 6, kind: input, shape index: {}]   ;;  %s1632_s7 = inlined_call_operand.vmem [shape: f32[1,32], index: 7, kind: input, shape index: {}]   ;;  %s1633_s8 = inlined_call_operand.hbm [shape: bf16[32,128], index: 8, kind: input, shape index: {}]   ;;  %s1634_s9 = inlined_call_operand.vmem [shape: f32[1,128], index: 9, kind: input, shape index: {}]   ;;  %s1635_s10 = inlined_call_operand.vmem [shape: bf16[128,32], index: 10, kind: input, shape index: {}]   ;;  %s1636_s11 = inlined_call_operand.vmem [shape: f32[1,32], index: 11, kind: input, shape index: {}]   ;;  %s1637_s12 = inlined_call_operand.hbm [shape: f32[2,8,32], index: 12, kind: output, shape index: {}]  }
   0x1   :  { %18 = vsyncpa [#allocation6], 0 }
   0x2   :  { %19 = vsyncpa [#allocation4], 0  ;;  %s32_s23 = sshll.u32 %s1629_s4, 4  ;;  %s1329_s24 = smov [#allocation2]   ;;  %s33_s23 = int_to_ptr.hbm [resolvable:$true] %s32_s23 }
   0x3   :  { %s34_s25 = sshll.u32 %s1329_s24, 4  ;;  %s51_s28 = sshll.u32 %s1633_s8, 4  ;;  %s35_s25 = int_to_ptr.vmem [resolvable:$true] %s34_s25  ;;  %s52_s28 = int_to_ptr.hbm [resolvable:$true] %s51_s28 }
   0x4   :  { %s1330_s29 = smov 64   ;;  %s1331_s30 = smov 4  }
   0x5   :  { %40 = dma.hbm_to_vmem [thread:$0]  %s33_s23, 1024, %s35_s25, [#allocation3], %s1330_s29, %s1330_s29, %s1331_s30  }
   0x6   :  { %s1332_s13 = smov [#allocation5]  }
   0x7   :  { %s53_s14 = sshll.u32 %s1332_s13, 4  ;;  %s54_s14 = int_to_ptr.vmem [resolvable:$true] %s53_s14 }
   0x8   :  { %59 = dma.hbm_to_vmem [thread:$0]  %s52_s28, 256, %s54_s14, [#allocation6], %s1330_s29, %s1330_s29, %s1331_s30  }
   0x9   :  { %1323 = dma.done.wait [#allocation3], 1024  }
   0xa   :  { %1324 = vsyncadd [#allocation3], 4294966272 }
   0xb   :  { %1325 = dma.done.wait [#allocation6], 256  }
   0xc   :  { %1326 = vsyncadd [#allocation6], 4294967040  ;;  %vm79_vm0 = vcmask 261120   ;;  %v1411_v0 = vld [vmem:[%s1625_s0] sm:$0xff]  ;;  %v1418_v2 = vld [vmem:[%s1625_s0 + $0x8] sm:$0xff]  ;;  %v1333_v4 = vmov 32.0  }
   0xd   :  { %v80_v1 = vsel %vm79_vm0, %v1411_v0, 0.0  ;;  %v83_v3 = vsel %vm79_vm0, %v1418_v2, 0.0  ;;  %1209 = vrcp.f32 %v1333_v4  ;;  %v1169_v22 = vld [vmem:[%s1628_s3 + $0x8] sm:$0xff]  ;;  %v1168_v25 = vld [vmem:[%s1628_s3] sm:$0xff]  ;;  %v1173_v32 = vld [vmem:[%s1628_s3 + $0x18] sm:$0xff]  ;;  %vm414_vm8 = vcmask 1043456  }
   0xe   :  { %81 = vadd.xlane.f32.xlu0 %v80_v1  ;;  %v1171_v23 = vld [vmem:[#allocation2 + $0x8] sm:$0xff]  ;;  %178 = vmatpush.bf16.msra.mxu0 %v1169_v22  ;;  %v1170_v27 = vld [vmem:[#allocation2] sm:$0xff]  ;;  %v1175_v33 = vld [vmem:[#allocation2 + $0x18] sm:$0xff]  ;;  %vm230_vm10 = vcmask 64512   ;;  %s1013_s15 = sshll.u32 %s1637_s12, 4  ;;  %s1014_s15 = int_to_ptr.hbm [resolvable:$true] %s1013_s15 }
   0xf   :  { %277 = vmatpush.bf16.msra.mxu3 %v1171_v23  ;;  %v1172_v35 = vld [vmem:[%s1628_s3 + $0x10] sm:$0xff]  ;;  %v1202_v43 = vld [vmem:[%s1626_s1] ss:$0 sm:$0xff] }
  0x10   :  { %v1174_v36 = vld [vmem:[#allocation2 + $0x10] sm:$0xff]  ;;  %v1203_v47 = vld [vmem:[%s1627_s2] ss:$0 sm:$0xff] }
  0x12   :  { %179 = vmatpush.bf16.msra.mxu0 %v1168_v25 }
  0x13   :  { %v1210_v5 = vpop.eup %1209  ;;  %278 = vmatpush.bf16.msra.mxu3 %v1170_v27 }
  0x14   :  { %v87_v6 = vmul.f32 32.0, %v1210_v5  ;;  %vm91_vm1 = vweird.f32 %v1210_v5 }
  0x16   :  { %84 = vadd.xlane.f32.xlu0 %v83_v3  ;;  %v88_v7 = vsub.f32 1.0, %v87_v6  ;;  %310 = vmatpush.bf16.msrb.mxu0 %v1173_v32 }
  0x17   :  { %401 = vmatpush.bf16.msrb.mxu3 %v1175_v33 }
  0x18   :  { %v89_v8 = vmul.f32 %v1210_v5, %v88_v7 }
  0x1a   :  { %v90_v9 = vadd.f32 %v1210_v5, %v89_v8  ;;  %311 = vmatpush.bf16.msrb.mxu0 %v1172_v35 }
  0x1b   :  { %402 = vmatpush.bf16.msrb.mxu3 %v1174_v36 }
  0x1c   :  { %v1422_v10 = vsel %vm91_vm1, %v1210_v5, %v90_v9 }
  0x81   :  { %v82_v11 = vpop.xlane.xlu0 %81 }
  0x82   :  { %v93_v12 = vmul.f32 %v1422_v10, %v82_v11 }
  0x84   :  { %v95_v13 = vsub.f32 %v1411_v0, %v93_v12 }
  0x86   :  { %v97_v14 = vmul.f32 %v95_v13, %v95_v13 }
  0x88   :  { %v99_v15 = vsel %vm79_vm0, %v97_v14, 0.0 }
  0x89   :  { %100 = vadd.xlane.f32.xlu1 %v99_v15  ;;  %v85_v16 = vpop.xlane.xlu0 %84 }
  0x8a   :  { %v94_v17 = vmul.f32 %v1422_v10, %v85_v16 }
  0x8c   :  { %v96_v18 = vsub.f32 %v1418_v2, %v94_v17 }
  0x8e   :  { %v98_v19 = vmul.f32 %v96_v18, %v96_v18 }
  0x90   :  { %v102_v20 = vsel %vm79_vm0, %v98_v19, 0.0 }
  0x91   :  { %103 = vadd.xlane.f32.xlu1 %v102_v20 }
  0xfc   :  { %v101_v21 = vpop.xlane.xlu1 %100 }
  0xfd   :  { %v105_v24 = vmul.f32 %v101_v21, %v1422_v10 }
  0xff   :  { %v107_v26 = vadd.f32 1e-05, %v105_v24  ;;  %v143_v24 = vlaneseq }
 0x101   :  { %1211 = vrsqrt.f32 %v107_v26  ;;  %vm115_vm3 = vweird.f32 %v107_v26  ;;  %v144_v25 = vshrl.u32 %v143_v24, 7 }
 0x104   :  { %v104_v28 = vpop.xlane.xlu1 %103 }
 0x105   :  { %v106_v29 = vmul.f32 %v104_v28, %v1422_v10 }
 0x107   :  { %v1212_v30 = vpop.eup %1211  ;;  %v108_v31 = vadd.f32 1e-05, %v106_v29 }
 0x108   :  { %v110_v34 = vmul.f32 %v1212_v30, %v107_v26  ;;  %vm116_vm2 = vweird.f32 %v1212_v30  ;;  %v146_v26 = vand.u32 127, %v143_v24 }
 0x109   :  { %1213 = vrsqrt.f32 %v108_v31  ;;  %vm117_vm4 = vmor %vm115_vm3, %vm116_vm2  ;;  %vm125_vm6 = vweird.f32 %v108_v31 }
 0x10a   :  { %v111_v37 = vmul.f32 %v1212_v30, %v110_v34  ;;  %vm1480_vm9 = vcmp.le.s32.totalorder %v146_v26, %v144_v25  ;;  %v1181_v26 = vld [vmem:[%s1628_s3 + $0x38] sm:$0xff] }
 0x10c   :  { %v112_v38 = vmul.f32 0.5, %v111_v37 }
 0x10e   :  { %v113_v39 = vsub.f32 1.5, %v112_v38 }
 0x10f   :  { %v1214_v40 = vpop.eup %1213 }
 0x110   :  { %v114_v41 = vmul.f32 %v1212_v30, %v113_v39  ;;  %v120_v42 = vmul.f32 %v1214_v40, %v108_v31  ;;  %vm126_vm5 = vweird.f32 %v1214_v40 }
 0x111   :  { %vm127_vm7 = vmor %vm125_vm6, %vm126_vm5 }
 0x112   :  { %v118_v44 = vsel %vm117_vm4, %v1212_v30, %v114_v41  ;;  %v121_v45 = vmul.f32 %v1214_v40, %v120_v42 }
 0x113   :  { %v129_v46 = vmul.f32 %v118_v44, %v95_v13 }
 0x114   :  { %v122_v48 = vmul.f32 0.5, %v121_v45 }
 0x115   :  { %v134_v49 = vmul.f32 %v1202_v43, %v129_v46 }
 0x116   :  { %v123_v50 = vsub.f32 1.5, %v122_v48 }
 0x117   :  { %v139_v51 = vadd.f32 %v1203_v47, %v134_v49 }
 0x118   :  { %v124_v52 = vmul.f32 %v1214_v40, %v123_v50 }
 0x119   :  { %v141_v53 = vpack.c.bf16 %v139_v51, %v139_v51 }
 0x11a   :  { %v128_v54 = vsel %vm127_vm7, %v1214_v40, %v124_v52 }
 0x11b   :  { %v130_v55 = vmul.f32 %v128_v54, %v96_v18  ;;  %v1451_v56 = vsel %vm79_vm0, %v141_v53, 0  ;;  %v154_v60 = vunpack.c.l.b16 %v141_v53 }
 0x11c   :  { %201 = vmatpush.bf16.xpose.msra.mxu2 %v1451_v56  ;;  %330 = vmatpush.bf16.xpose.msra.mxu1 %v1451_v56 }
 0x11d   :  { %v135_v57 = vmul.f32 %v1202_v43, %v130_v55 }
 0x11f   :  { %v140_v58 = vadd.f32 %v1203_v47, %v135_v57 }
 0x121   :  { %v142_v59 = vpack.c.bf16 %v140_v58, %v140_v58 }
 0x123   :  { %v155_v61 = vunpack.c.l.b16 %v142_v59  ;;  %v1456_v62 = vsel %vm79_vm0, %v142_v59, 0  ;;  %v1177_v59 = vld [vmem:[%s1628_s3 + $0x28] sm:$0xff] }
 0x124   :  { %220 = vmatpush.bf16.xpose.msrb.mxu2 %v1456_v62 }
 0x125   :  { %v1459_v63 = vpack.c.b16 %v155_v61, %v154_v60  ;;  %v1176_v60 = vld [vmem:[%s1628_s3 + $0x20] sm:$0xff] }
 0x127   :  { %1035 = vmatmul.msk.bf16.vlgmr.msra.gmra.mxu0 %vm79_vm0, %v1459_v63  ;;  %1046 = vmatmul.msk.bf16.vlgmr.msra.gmra.mxu3 %vm79_vm0, %v1459_v63 }
 0x137   :  { %1059 = vmatmul.msk.bf16.vlgmr.msrb.gmra.mxu0 %vm79_vm0, %v1459_v63  ;;  %1070 = vmatmul.msk.bf16.vlgmr.msrb.gmra.mxu3 %vm79_vm0, %v1459_v63 }
 0x1a4   :  { %v181_v1 = vpop.f32.mrf.mxu0 }
 0x1a5   :  { %v186_v3 = vpack.c.bf16 %v181_v1, %v181_v1  ;;  %v1179_v1 = vld [vmem:[#allocation2 + $0x28] sm:$0xff] }
 0x1a7   :  { %1036 = vmatmul.msk.bf16.vlgmr.msra.gmra.mxu2 %vm79_vm0, %v186_v3 }
 0x1a8   :  { %346 = vmatpush.bf16.xpose.msra.mxu2 %v1456_v62 }
 0x1aa   :  { %v280_v4 = vpop.f32.mrf.mxu3 }
 0x1ab   :  { %v285_v7 = vpack.c.bf16 %v280_v4, %v280_v4 }
 0x1ac   :  { %v183_v5 = vpop.f32.mrf.mxu0 }
 0x1ad   :  { %v187_v11 = vpack.c.bf16 %v183_v5, %v183_v5  ;;  %v454_v14 = vsel %vm414_vm8, %v285_v7, 0 }
 0x1b2   :  { %v282_v6 = vpop.f32.mrf.mxu3 }
 0x1b3   :  { %v286_v8 = vpack.c.bf16 %v282_v6, %v282_v6  ;;  %v1178_v6 = vld [vmem:[#allocation2 + $0x20] sm:$0xff] }
 0x1b4   :  { %v313_v9 = vpop.f32.mrf.mxu0 }
 0x1b5   :  { %v473_v12 = vsel %vm414_vm8, %v286_v8, 0  ;;  %v318_v13 = vpack.c.bf16 %v313_v9, %v313_v9 }
 0x1b6   :  { %482 = vmatpush.bf16.msra.mxu3 %v473_v12 }
 0x1b7   :  { %1037 = vmatmul.msk.bf16.vlgmr.msrb.gmra.mxu2 %vm79_vm0, %v187_v11  ;;  %1060 = vmatmul.msk.bf16.vlgmr.msra.gmra.mxu1 %vm79_vm0, %v318_v13 }
 0x1b8   :  { %463 = vmatpush.bf16.msrb.mxu2 %v454_v14 }
 0x1ba   :  { %v404_v15 = vpop.f32.mrf.mxu3  ;;  %602 = vmatpush.bf16.msrb.mxu3 %v1179_v1 }
 0x1bb   :  { %v409_v16 = vpack.c.bf16 %v404_v15, %v404_v15 }
 0x1bc   :  { %v315_v18 = vpop.f32.mrf.mxu0 }
 0x1bd   :  { %v416_v17 = vsel %vm414_vm8, %v409_v16, 0  ;;  %v319_v21 = vpack.c.bf16 %v315_v18, %v315_v18 }
 0x1be   :  { %425 = vmatpush.bf16.msra.mxu0 %v416_v17  ;;  %603 = vmatpush.bf16.msrb.mxu3 %v1178_v6 }
 0x1c2   :  { %v406_v19 = vpop.f32.mrf.mxu3  ;;  %511 = vmatpush.bf16.msrb.mxu0 %v1177_v59 }
 0x1c3   :  { %v410_v20 = vpack.c.bf16 %v406_v19, %v406_v19 }
 0x1c5   :  { %v435_v22 = vsel %vm414_vm8, %v410_v20, 0 }
 0x1c6   :  { %444 = vmatpush.bf16.msrb.mxu1 %v435_v22  ;;  %512 = vmatpush.bf16.msrb.mxu0 %v1176_v60 }
 0x1c7   :  { %1061 = vmatmul.msk.bf16.vlgmr.msra.gmra.mxu2 %vm79_vm0, %v319_v21 }
 0x1c8   :  { %547 = vmatpush.bf16.xpose.msra.mxu2 %v1456_v62 }
 0x1ca   :  { %531 = vmatpush.bf16.xpose.msra.mxu1 %v1451_v56 }
 0x22a   :  { %v203_v23 = vpop.f32.mrf.mxu2 }
 0x22b   :  { %v228_v46 = vsel %vm1480_vm9, %v203_v23, -inf }
 0x22c   :  { %v231_v47 = vsel %vm230_vm10, %v228_v46, -inf }
 0x232   :  { %v205_v27 = vpop.f32.mrf.mxu2 }
 0x234   :  { %v332_v29 = vpop.f32.mrf.mxu1 }
 0x235   :  { %v352_v30 = vsel %vm1480_vm9, %v332_v29, -inf }
 0x236   :  { %v354_v31 = vsel %vm230_vm10, %v352_v30, -inf }
 0x237   :  { %355 = vmax.xlane.f32.xlu2 %v354_v31 }
 0x23a   :  { %v222_v32 = vpop.f32.mrf.mxu2 }
 0x23b   :  { %v229_v38 = vsel %vm1480_vm9, %v222_v32, -inf }
 0x23c   :  { %v334_v33 = vpop.f32.mrf.mxu1  ;;  %v234_v40 = vsel %vm230_vm10, %v229_v38, -inf }
 0x242   :  { %v224_v34 = vpop.f32.mrf.mxu2 }
 0x24a   :  { %v348_v35 = vpop.f32.mrf.mxu2 }
 0x24b   :  { %v353_v36 = vsel %vm1480_vm9, %v348_v35, -inf }
 0x24c   :  { %v357_v37 = vsel %vm230_vm10, %v353_v36, -inf }
 0x24d   :  { %358 = vmax.xlane.f32.xlu0 %v357_v37 }
 0x252   :  { %v350_v39 = vpop.f32.mrf.mxu2 }
 0x255   :  { %235 = vmax.xlane.f32.xlu0 %v234_v40 }
 0x2aa   :  { %v356_v41 = vpop.xlane.xlu2 %355 }
 0x2ab   :  { %v360_v42 = vsub.f32 %v352_v30, %v356_v41 }
 0x2ad   :  { %v362_v43 = vmul.f32 1.442695, %v360_v42 }
 0x2af   :  { %1215 = vpow2.f32 %v362_v43 }
 0x2b5   :  { %v1216_v44 = vpop.eup %1215 }
 0x2b6   :  { %v366_v45 = vsel %vm230_vm10, %v1216_v44, 0.0 }
 0x2b7   :  { %367 = vadd.xlane.f32.xlu2 %v366_v45 }
 0x2bf   :  { %232 = vmax.xlane.f32.xlu2 %v231_v47 }
 0x2c0   :  { %v359_v48 = vpop.xlane.xlu0 %358 }
 0x2c1   :  { %v361_v49 = vsub.f32 %v353_v36, %v359_v48 }
 0x2c3   :  { %v364_v50 = vmul.f32 1.442695, %v361_v49 }
 0x2c5   :  { %1217 = vpow2.f32 %v364_v50 }
 0x2c8   :  { %v236_v51 = vpop.xlane.xlu0 %235 }
 0x2c9   :  { %v238_v52 = vsub.f32 %v229_v38, %v236_v51 }
 0x2cb   :  { %v1218_v53 = vpop.eup %1217  ;;  %v241_v54 = vmul.f32 1.442695, %v238_v52 }
 0x2cc   :  { %v369_v55 = vsel %vm230_vm10, %v1218_v53, 0.0 }
 0x2cd   :  { %1219 = vpow2.f32 %v241_v54  ;;  %370 = vadd.xlane.f32.xlu1 %v369_v55 }
 0x2d3   :  { %v1220_v57 = vpop.eup %1219 }
 0x2d4   :  { %v246_v58 = vsel %vm230_vm10, %v1220_v57, 0.0 }
 0x2d5   :  { %247 = vadd.xlane.f32.xlu2 %v246_v58 }
 0x32a   :  { %v368_v61 = vpop.xlane.xlu2 %367 }
 0x32b   :  { %1221 = vrcp.f32 %v368_v61 }
 0x331   :  { %v1222_v3 = vpop.eup %1221 }
 0x332   :  { %v374_v4 = vmul.f32 %v1222_v3, %v1216_v44  ;;  %v233_v5 = vpop.xlane.xlu2 %232 }
 0x333   :  { %v237_v7 = vsub.f32 %v228_v46, %v233_v5 }
 0x334   :  { %v376_v8 = vpack.c.bf16 %v374_v4, %v374_v4 }
 0x335   :  { %v239_v9 = vmul.f32 1.442695, %v237_v7 }
 0x336   :  { %1071 = vmatmul.msk.bf16.vlgmr.msra.gmra.mxu0 %vm230_vm10, %v376_v8 }
 0x337   :  { %1223 = vpow2.f32 %v239_v9 }
 0x33d   :  { %v1224_v11 = vpop.eup %1223 }
 0x33e   :  { %v243_v12 = vsel %vm230_vm10, %v1224_v11, 0.0 }
 0x33f   :  { %244 = vadd.xlane.f32.xlu1 %v243_v12 }
 0x340   :  { %v371_v13 = vpop.xlane.xlu1 %370 }
 0x341   :  { %1225 = vrcp.f32 %v371_v13  ;;  %v1182_v13 = vld [vmem:[#allocation2 + $0x30] sm:$0xff] }
 0x346   :  { %1087 = vmatmul.msk.bf16.vlgmr.msrb.gmra.mxu0 %vm79_vm0, %v1459_v63 }
 0x347   :  { %v1226_v14 = vpop.eup %1225 }
 0x348   :  { %v375_v15 = vmul.f32 %v1226_v14, %v1218_v53  ;;  %v248_v16 = vpop.xlane.xlu2 %247 }
 0x349   :  { %1227 = vrcp.f32 %v248_v16 }
 0x34a   :  { %v377_v17 = vpack.c.bf16 %v375_v15, %v375_v15 }
 0x34c   :  { %1072 = vmatmul.msk.bf16.vlgmr.msrb.gmra.mxu1 %vm230_vm10, %v377_v17 }
 0x34f   :  { %v1228_v18 = vpop.eup %1227 }
 0x350   :  { %v252_v19 = vmul.f32 %v1228_v18, %v1220_v57 }
 0x352   :  { %v254_v20 = vpack.c.bf16 %v252_v19, %v252_v19 }
 0x354   :  { %1074 = vmatmul.msk.bf16.vlgmr.msra.gmra.mxu3 %vm230_vm10, %v254_v20 }
 0x355   :  { %695 = vmatpush.bf16.xpose.msra.mxu3 %v1451_v56  ;;  %v1180_v56 = vld [vmem:[%s1628_s3 + $0x30] sm:$0xff] }
 0x364   :  { %1098 = vmatmul.msk.bf16.vlgmr.msrb.gmra.mxu3 %vm79_vm0, %v1459_v63 }
 0x3b2   :  { %v245_v21 = vpop.xlane.xlu1 %244 }
 0x3b3   :  { %1229 = vrcp.f32 %v245_v21  ;;  %v1514_v22 = vpop.f32.mrf.mxu0 }
 0x3b9   :  { %v1230_v23 = vpop.eup %1229 }
 0x3ba   :  { %v251_v24 = vmul.f32 %v1230_v23, %v1224_v11  ;;  %v1183_v11 = vld [vmem:[#allocation2 + $0x38] sm:$0xff] }
 0x3bb   :  { %v429_v25 = vpop.f32.mrf.mxu0 }
 0x3bc   :  { %v253_v27 = vpack.c.bf16 %v251_v24, %v251_v24 }
 0x3be   :  { %1073 = vmatmul.msk.bf16.vlgmr.msrb.gmra.mxu2 %vm230_vm10, %v253_v27 }
 0x3bf   :  { %675 = vmatpush.bf16.msrb.mxu2 %v1181_v26 }
 0x3c3   :  { %v514_v29 = vpop.f32.mrf.mxu0  ;;  %676 = vmatpush.bf16.msrb.mxu2 %v1180_v56 }
 0x3c4   :  { %v519_v30 = vpack.c.bf16 %v514_v29, %v514_v29 }
 0x3c6   :  { %1088 = vmatmul.msk.bf16.vlgmr.msra.gmra.mxu1 %vm79_vm0, %v519_v30 }
 0x3c9   :  { %v446_v31 = vpop.f32.mrf.mxu1 }
 0x3cb   :  { %v516_v32 = vpop.f32.mrf.mxu0 }
 0x3cc   :  { %v520_v33 = vpack.c.bf16 %v516_v32, %v516_v32 }
 0x3ce   :  { %1089 = vmatmul.msk.bf16.vlgmr.msra.gmra.mxu2 %vm79_vm0, %v520_v33 }
 0x3d1   :  { %v448_v34 = vpop.f32.mrf.mxu1 }
 0x3d7   :  { %v484_v35 = vpop.f32.mrf.mxu3 }
 0x3d8   :  { %v1525_v36 = vadd.f32 %v484_v35, %v446_v31 }
 0x3de   :  { %1113 = vmatmul.msk.bf16.vlgmr.msrb.gmra.mxu2 %vm79_vm0, %v1459_v63 }
 0x3df   :  { %v486_v37 = vpop.f32.mrf.mxu3 }
 0x3e7   :  { %v605_v38 = vpop.f32.mrf.mxu3 }
 0x3e8   :  { %v610_v39 = vpack.c.bf16 %v605_v38, %v605_v38 }
 0x3ea   :  { %v616_v40 = vsel %vm414_vm8, %v610_v39, 0 }
 0x3eb   :  { %625 = vmatpush.bf16.msra.mxu0 %v616_v40 }
 0x3ef   :  { %711 = vmatpush.bf16.xpose.msrb.mxu0 %v1456_v62  ;;  %v607_v41 = vpop.f32.mrf.mxu3 }
 0x3f0   :  { %v611_v42 = vpack.c.bf16 %v607_v41, %v607_v41 }
 0x3f2   :  { %v635_v43 = vsel %vm414_vm8, %v611_v42, 0 }
 0x3f3   :  { %644 = vmatpush.bf16.msrb.mxu1 %v635_v43 }
 0x3f7   :  { %766 = vmatpush.bf16.msra.mxu1 %v1183_v11 }
 0x3fb   :  { %767 = vmatpush.bf16.msra.mxu1 %v1182_v13 }
 0x441   :  { %v465_v44 = vpop.f32.mrf.mxu2 }
 0x442   :  { %v466_v29 = vadd.f32 %v465_v44, %v1514_v22 }
 0x443   :  { %v533_v45 = vpop.f32.mrf.mxu1 }
 0x444   :  { %v553_v46 = vsel %vm1480_vm9, %v533_v45, -inf }
 0x445   :  { %v555_v47 = vsel %vm230_vm10, %v553_v46, -inf }
 0x446   :  { %556 = vmax.xlane.f32.xlu0 %v555_v47 }
 0x449   :  { %v467_v48 = vpop.f32.mrf.mxu2 }
 0x44b   :  { %v535_v49 = vpop.f32.mrf.mxu1 }
 0x451   :  { %v549_v50 = vpop.f32.mrf.mxu2 }
 0x452   :  { %v554_v51 = vsel %vm1480_vm9, %v549_v50, -inf }
 0x453   :  { %v558_v62 = vsel %vm230_vm10, %v554_v51, -inf }
 0x454   :  { %559 = vmax.xlane.f32.xlu2 %v558_v62 }
 0x459   :  { %v551_v52 = vpop.f32.mrf.mxu2 }
 0x461   :  { %v678_v53 = vpop.f32.mrf.mxu2 }
 0x462   :  { %v683_v54 = vpack.c.bf16 %v678_v53, %v678_v53  ;;  %v1204_v53 = vld [vmem:[%s1630_s5] ss:$0 sm:$0xff]  ;;  %s1336_s5 = smov 8  }
 0x464   :  { %1114 = vmatmul.msk.bf16.vlgmr.msra.gmra.mxu3 %vm79_vm0, %v683_v54 }
 0x469   :  { %v680_v20 = vpop.f32.mrf.mxu2 }
 0x46a   :  { %v684_v23 = vpack.c.bf16 %v680_v20, %v680_v20 }
 0x4b9   :  { %v557_v55 = vpop.xlane.xlu0 %556 }
 0x4ba   :  { %v561_v57 = vsub.f32 %v553_v46, %v557_v55 }
 0x4bc   :  { %v563_v58 = vmul.f32 1.442695, %v561_v57 }
 0x4be   :  { %1231 = vpow2.f32 %v563_v58 }
 0x4c4   :  { %v1232_v59 = vpop.eup %1231 }
 0x4c5   :  { %v567_v60 = vsel %vm230_vm10, %v1232_v59, 0.0 }
 0x4c6   :  { %568 = vadd.xlane.f32.xlu1 %v567_v60 }
 0x4c7   :  { %v560_v61 = vpop.xlane.xlu2 %559 }
 0x4c8   :  { %v562_v1 = vsub.f32 %v554_v51, %v560_v61 }
 0x4ca   :  { %v565_v3 = vmul.f32 1.442695, %v562_v1 }
 0x4cc   :  { %1233 = vpow2.f32 %v565_v3 }
 0x4d2   :  { %v1234_v4 = vpop.eup %1233 }
 0x4d3   :  { %v570_v5 = vsel %vm230_vm10, %v1234_v4, 0.0 }
 0x4d4   :  { %571 = vadd.xlane.f32.xlu0 %v570_v5 }
 0x4e7   :  { %v697_v6 = vpop.f32.mrf.mxu3 }
 0x4e8   :  { %v717_v7 = vsel %vm1480_vm9, %v697_v6, -inf }
 0x4e9   :  { %v719_v8 = vsel %vm230_vm10, %v717_v7, -inf }
 0x4ea   :  { %720 = vmax.xlane.f32.xlu1 %v719_v8 }
 0x4ef   :  { %v699_v9 = vpop.f32.mrf.mxu3 }
 0x539   :  { %v569_v12 = vpop.xlane.xlu1 %568 }
 0x53a   :  { %1235 = vrcp.f32 %v569_v12 }
 0x540   :  { %v1236_v14 = vpop.eup %1235 }
 0x541   :  { %v575_v15 = vmul.f32 %v1236_v14, %v1232_v59 }
 0x543   :  { %v577_v16 = vpack.c.bf16 %v575_v15, %v575_v15 }
 0x545   :  { %1099 = vmatmul.msk.bf16.vlgmr.msra.gmra.mxu0 %vm230_vm10, %v577_v16 }
 0x547   :  { %v572_v17 = vpop.xlane.xlu0 %571 }
 0x548   :  { %1237 = vrcp.f32 %v572_v17 }
 0x54e   :  { %v1238_v18 = vpop.eup %1237 }
 0x54f   :  { %v576_v19 = vmul.f32 %v1238_v18, %v1234_v4 }
 0x551   :  { %v578_v21 = vpack.c.bf16 %v576_v19, %v576_v19 }
 0x553   :  { %1100 = vmatmul.msk.bf16.vlgmr.msrb.gmra.mxu1 %vm230_vm10, %v578_v21  ;;  %v1185_v21 = vld [vmem:[#allocation5 + $0x8] sm:$0xff] }
 0x554   :  { %910 = vmatpush.bf16.msra.mxu0 %v1185_v21 }
 0x555   :  { %1115 = vmatmul.msk.bf16.vlgmr.msrb.gmra.mxu0 %vm79_vm0, %v684_v23 }
 0x55d   :  { %v721_v24 = vpop.xlane.xlu1 %720 }
 0x55e   :  { %v725_v25 = vsub.f32 %v717_v7, %v721_v24  ;;  %v1184_v24 = vld [vmem:[#allocation5] sm:$0xff] }
 0x55f   :  { %911 = vmatpush.bf16.msra.mxu0 %v1184_v24 }
 0x560   :  { %v727_v26 = vmul.f32 1.442695, %v725_v25 }
 0x562   :  { %1239 = vpow2.f32 %v727_v26  ;;  %v1193_v26 = vld [vmem:[%s1635_s10 + $0x38] sm:$0xff] }
 0x563   :  { %1124 = vmatmul.msk.bf16.vlgmr.msra.gmra.mxu1 %vm79_vm0, %v1459_v63 }
 0x564   :  { %989 = vmatpush.bf16.msrb.mxu1 %v1193_v26 }
 0x568   :  { %v1240_v27 = vpop.eup %1239 }
 0x569   :  { %v731_v56 = vsel %vm230_vm10, %v1240_v27, 0.0 }
 0x56a   :  { %732 = vadd.xlane.f32.xlu0 %v731_v56 }
 0x5c2   :  { %v627_v30 = vpop.f32.mrf.mxu0 }
 0x5c3   :  { %v650_v31 = vadd.f32 %v627_v30, %v466_v29  ;;  %v1192_v30 = vld [vmem:[%s1635_s10 + $0x30] sm:$0xff] }
 0x5c4   :  { %990 = vmatpush.bf16.msrb.mxu1 %v1192_v30 }
 0x5ca   :  { %v629_v32 = vpop.f32.mrf.mxu0 }
 0x5d0   :  { %v646_v33 = vpop.f32.mrf.mxu1 }
 0x5d1   :  { %v651_v34 = vadd.f32 %v646_v33, %v1525_v36  ;;  %v1191_v33 = vld [vmem:[%s1635_s10 + $0x28] sm:$0xff] }
 0x5d2   :  { %v713_v35 = vpop.f32.mrf.mxu0  ;;  %991 = vmatpush.bf16.msrb.mxu1 %v1191_v33 }
 0x5d3   :  { %v718_v37 = vsel %vm1480_vm9, %v713_v35, -inf  ;;  %v1190_v35 = vld [vmem:[%s1635_s10 + $0x20] sm:$0xff] }
 0x5d4   :  { %v722_v38 = vsel %vm230_vm10, %v718_v37, -inf }
 0x5d5   :  { %723 = vmax.xlane.f32.xlu2 %v722_v38 }
 0x5d6   :  { %992 = vmatpush.bf16.msrb.mxu1 %v1190_v35 }
 0x5d8   :  { %v648_v63 = vpop.f32.mrf.mxu1 }
 0x5da   :  { %v715_v39 = vpop.f32.mrf.mxu0 }
 0x5dd   :  { %v733_v40 = vpop.xlane.xlu0 %732 }
 0x5de   :  { %1241 = vrcp.f32 %v733_v40 }
 0x5e0   :  { %v769_v41 = vpop.f32.mrf.mxu1 }
 0x5e1   :  { %v774_v42 = vpack.c.bf16 %v769_v41, %v769_v41 }
 0x5e3   :  { %v780_v22 = vsel %vm414_vm8, %v774_v42, 0  ;;  %v1205_v42 = vld [vmem:[%s1631_s6] ss:$0 sm:$0xff] }
 0x5e4   :  { %v1242_v43 = vpop.eup %1241  ;;  %789 = vmatpush.bf16.msra.mxu2 %v780_v22 }
 0x5e5   :  { %v739_v44 = vmul.f32 %v1242_v43, %v1240_v27 }
 0x5e7   :  { %v741_v45 = vpack.c.bf16 %v739_v44, %v739_v44 }
 0x5e8   :  { %v771_v36 = vpop.f32.mrf.mxu1 }
 0x5e9   :  { %v775_v46 = vpack.c.bf16 %v771_v36, %v771_v36  ;;  %1125 = vmatmul.msk.bf16.vlgmr.msra.gmra.mxu2 %vm230_vm10, %v741_v45  ;;  %v1206_v45 = vld [vmem:[%s1632_s7] ss:$0 sm:$0xff] }
 0x5eb   :  { %v799_v28 = vsel %vm414_vm8, %v775_v46, 0 }
 0x5ec   :  { %808 = vmatpush.bf16.msrb.mxu3 %v799_v28 }
 0x648   :  { %v724_v47 = vpop.xlane.xlu2 %723 }
 0x649   :  { %v726_v48 = vsub.f32 %v718_v37, %v724_v47 }
 0x64b   :  { %v729_v49 = vmul.f32 1.442695, %v726_v48 }
 0x64d   :  { %1243 = vpow2.f32 %v729_v49 }
 0x653   :  { %v1244_v50 = vpop.eup %1243 }
 0x654   :  { %v734_v51 = vsel %vm230_vm10, %v1244_v50, 0.0 }
 0x655   :  { %735 = vadd.xlane.f32.xlu1 %v734_v51  ;;  %v1188_v51 = vld [vmem:[%s1635_s10 + $0x10] sm:$0xff] }
 0x66c   :  { %v791_v62 = vpop.f32.mrf.mxu2 }
 0x66d   :  { %v814_v52 = vadd.f32 %v791_v62, %v650_v31  ;;  %v1187_v62 = vld [vmem:[%s1635_s10 + $0x8] sm:$0xff] }
 0x66f   :  { %v816_v54 = vadd.f32 %v814_v52, %v1411_v0  ;;  %v1186_v52 = vld [vmem:[%s1635_s10] sm:$0xff] }
 0x671   :  { %v1563_v55 = vadd.f32 %v1204_v53, %v816_v54  ;;  %v1207_v54 = vld [vmem:[%s1634_s9] ss:$0 sm:$0xff] }
 0x673   :  { %v826_v57 = vsel %vm79_vm0, %v1563_v55, 0.0 }
 0x674   :  { %v793_v58 = vpop.f32.mrf.mxu2  ;;  %827 = vadd.xlane.f32.xlu2 %v826_v57 }
 0x6c8   :  { %v736_v59 = vpop.xlane.xlu1 %735 }
 0x6c9   :  { %1245 = vrcp.f32 %v736_v59 }
 0x6cf   :  { %v1246_v60 = vpop.eup %1245 }
 0x6d0   :  { %v740_v61 = vmul.f32 %v1246_v60, %v1244_v50  ;;  %v1189_v50 = vld [vmem:[%s1635_s10 + $0x18] sm:$0xff]  ;;  %s1334_s10 = smov [#allocation7]  }
 0x6d1   :  { %993 = vmatpush.bf16.msrb.mxu1 %v1189_v50  ;;  %s1011_s4 = sshll.u32 %s1334_s10, 4  ;;  %s1012_s4 = int_to_ptr.vmem [resolvable:$true] %s1011_s4 }
 0x6d2   :  { %v742_v1 = vpack.c.bf16 %v740_v61, %v740_v61 }
 0x6d4   :  { %1126 = vmatmul.msk.bf16.vlgmr.msrb.gmra.mxu3 %vm230_vm10, %v742_v1 }
 0x6d5   :  { %994 = vmatpush.bf16.msrb.mxu1 %v1188_v51 }
 0x6d9   :  { %995 = vmatpush.bf16.msrb.mxu1 %v1187_v62 }
 0x6dd   :  { %996 = vmatpush.bf16.msrb.mxu1 %v1186_v52 }
 0x6e7   :  { %v828_v3 = vpop.xlane.xlu2 %827 }
 0x6e8   :  { %v832_v4 = vmul.f32 %v828_v3, %v1422_v10  ;;  %v1208_v3 = vld [vmem:[%s1636_s11] ss:$0 sm:$0xff]  ;;  %s1335_s11 = smov 128  }
 0x6ea   :  { %v834_v5 = vsub.f32 %v1563_v55, %v832_v4 }
 0x6ec   :  { %v836_v0 = vmul.f32 %v834_v5, %v834_v5 }
 0x6ee   :  { %v838_v6 = vsel %vm79_vm0, %v836_v0, 0.0 }
 0x6ef   :  { %839 = vadd.xlane.f32.xlu1 %v838_v6 }
 0x757   :  { %v810_v7 = vpop.f32.mrf.mxu3 }
 0x758   :  { %v815_v8 = vadd.f32 %v810_v7, %v651_v34 }
 0x75a   :  { %v817_v9 = vadd.f32 %v815_v8, %v1418_v2 }
 0x75c   :  { %v1572_v11 = vadd.f32 %v1204_v53, %v817_v9 }
 0x75e   :  { %v829_v12 = vsel %vm79_vm0, %v1572_v11, 0.0 }
 0x75f   :  { %830 = vadd.xlane.f32.xlu0 %v829_v12  ;;  %v812_v13 = vpop.f32.mrf.mxu3 }
 0x762   :  { %v840_v19 = vpop.xlane.xlu1 %839 }
 0x763   :  { %v844_v20 = vmul.f32 %v840_v19, %v1422_v10 }
 0x765   :  { %v846_v2 = vadd.f32 1e-05, %v844_v20 }
 0x767   :  { %1247 = vrsqrt.f32 %v846_v2  ;;  %vm854_vm12 = vweird.f32 %v846_v2 }
 0x76d   :  { %v1248_v23 = vpop.eup %1247 }
 0x76e   :  { %v849_v25 = vmul.f32 %v1248_v23, %v846_v2  ;;  %vm855_vm11 = vweird.f32 %v1248_v23 }
 0x76f   :  { %vm856_vm13 = vmor %vm854_vm12, %vm855_vm11 }
 0x770   :  { %v850_v27 = vmul.f32 %v1248_v23, %v849_v25 }
 0x772   :  { %v851_v32 = vmul.f32 0.5, %v850_v27 }
 0x774   :  { %v852_v34 = vsub.f32 1.5, %v851_v32 }
 0x776   :  { %v853_v37 = vmul.f32 %v1248_v23, %v852_v34 }
 0x778   :  { %v857_v39 = vsel %vm856_vm13, %v1248_v23, %v853_v37 }
 0x779   :  { %v868_v22 = vmul.f32 %v857_v39, %v834_v5 }
 0x77b   :  { %v873_v36 = vmul.f32 %v1205_v42, %v868_v22 }
 0x77d   :  { %v878_v47 = vadd.f32 %v1206_v45, %v873_v36 }
 0x7d2   :  { %v831_v14 = vpop.xlane.xlu0 %830 }
 0x7d3   :  { %v833_v15 = vmul.f32 %v831_v14, %v1422_v10 }
 0x7d5   :  { %v835_v16 = vsub.f32 %v1572_v11, %v833_v15 }
 0x7d7   :  { %v837_v17 = vmul.f32 %v835_v16, %v835_v16 }
 0x7d9   :  { %v841_v18 = vsel %vm79_vm0, %v837_v17, 0.0 }
 0x7da   :  { %842 = vadd.xlane.f32.xlu2 %v841_v18 }
 0x84d   :  { %v843_v56 = vpop.xlane.xlu2 %842 }
 0x84e   :  { %v845_v29 = vmul.f32 %v843_v56, %v1422_v10 }
 0x850   :  { %v847_v31 = vadd.f32 1e-05, %v845_v29 }
 0x852   :  { %1249 = vrsqrt.f32 %v847_v31  ;;  %vm864_vm15 = vweird.f32 %v847_v31 }
 0x858   :  { %v1250_v10 = vpop.eup %1249 }
 0x859   :  { %v859_v38 = vmul.f32 %v1250_v10, %v847_v31  ;;  %vm865_vm14 = vweird.f32 %v1250_v10 }
 0x85a   :  { %vm866_vm1 = vmor %vm864_vm15, %vm865_vm14 }
 0x85b   :  { %v860_v63 = vmul.f32 %v1250_v10, %v859_v38 }
 0x85d   :  { %v861_v40 = vmul.f32 0.5, %v860_v63 }
 0x85f   :  { %v862_v41 = vsub.f32 1.5, %v861_v40 }
 0x861   :  { %v863_v43 = vmul.f32 %v1250_v10, %v862_v41 }
 0x863   :  { %v867_v44 = vsel %vm866_vm1, %v1250_v10, %v863_v43 }
 0x864   :  { %v869_v46 = vmul.f32 %v867_v44, %v835_v16 }
 0x866   :  { %v874_v28 = vmul.f32 %v1205_v42, %v869_v46 }
 0x868   :  { %v879_v48 = vadd.f32 %v1206_v45, %v874_v28 }
 0x86a   :  { %v880_v49 = vpack.c.bf16 %v879_v48, %v878_v47 }
 0x86c   :  { %1135 = vmatmul.msk.bf16.vlgmr.msra.gmra.mxu0 %vm79_vm0, %v880_v49 }
 0x8e9   :  { %v913_v53 = vpop.f32.mrf.mxu0 }
 0x8ea   :  { %v914_v57 = vadd.f32 %v1207_v54, %v913_v53 }
 0x8ec   :  { %v918_v60 = vmax.f32 %v914_v57, 0.0 }
 0x8f1   :  { %v915_v58 = vpop.f32.mrf.mxu0 }
 0x8f2   :  { %v916_v59 = vadd.f32 %v1207_v54, %v915_v58 }
 0x8f4   :  { %v919_v61 = vmax.f32 %v916_v59, 0.0 }
 0x8f6   :  { %v920_v1 = vpack.c.bf16 %v919_v61, %v918_v60 }
 0x8f8   :  { %997 = vmatmul.bf16.vlgmr.msrb.gmra.mxu1 %v920_v1 }
 0x975   :  { %v998_v4 = vpop.f32.mrf.mxu1 }
 0x976   :  { %v999_v5 = vadd.f32 %v1208_v3, %v998_v4 }
 0x978   :  { %v1003_v0 = vadd.f32 %v999_v5, %v1563_v55 }
 0x97a   :  { %1005 = vst.msk [vmem:[#allocation7] sm:$0xff] %vm79_vm0, %v1003_v0 }
 0x97d   :  { %v1000_v6 = vpop.f32.mrf.mxu1 }
 0x97e   :  { %v1001_v7 = vadd.f32 %v1208_v3, %v1000_v6 }
 0x980   :  { %v1004_v8 = vadd.f32 %v1001_v7, %v1572_v11 }
 0x982   :  { %1006 = vst.msk [vmem:[#allocation7 + $0x8] sm:$0xff] %vm79_vm0, %v1004_v8 }
 0x983   :  { %1019 = dma.vmem_to_hbm [thread:$0]  %s1012_s4, 256, %s1014_s15, [#allocation4], %s1335_s11, %s1335_s11, %s1336_s5  }
 0x984   :  { %1327 = dma.done.wait [#allocation4], 256  }
 0x985   :  { %1328 = vsyncadd [#allocation4], 4294967040 }
 0x986   :  { %1024 = vsyncpa [#allocation3], 1 }
 0x987   :  { %1025 = vsyncpa [#allocation6], 1 }
 0x988   :  { %1026 = vsyncpa [#allocation4], 1 }

</bundles_post_ra>
